<compile_context>
chip_gen: v6e
topology: v6e:2x2x1
jax: 0.10.0
libtpu: 0.0.40
codegen_flags: <defaults>
</compile_context>

<pallas_src>
import functools

import jax
import jax.numpy as jnp
from jax.experimental import pallas as pl
from jax.experimental.pallas import tpu as pltpu


def _drm_kernel(xT_ref,                 # (input_dim, tm)
                w_in_ref, b_in_ref,     # (m, input_dim), (m, 1)
                w_hid_ref, b_hid_ref,   # (4, m, m), (4, m, 1)   (out,in) layout
                w_out_ref, b_out_ref,   # (m, output_dim), (1, output_dim)
                o_ref,                  # (output_dim, tm)
                *, input_dim, output_dim):
    f32 = jnp.float32
    x = xT_ref[...].astype(f32)
    w_in = w_in_ref[...].astype(f32)
    b_in = b_in_ref[...].astype(f32)

    if input_dim == 1:
        # Degenerate K=1 "matmul": pure VPU broadcast FMA + EUP tanh, no MXU pass.
        y = jnp.tanh(w_in * x + b_in)                         # (m,1)*(1,tm) -> (m,tm)
    else:
        y = jnp.tanh(jnp.dot(w_in, x, preferred_element_type=f32) + b_in)

    w_hid = w_hid_ref[...].astype(f32)
    b_hid = b_hid_ref[...].astype(f32)

    def res_block(h, wa, ba, wb, bb):
        # h + tanh(Wb @ tanh(Wa @ h + ba) + bb); the two dots are the only MXU work.
        t = jnp.tanh(jnp.dot(wa, h, preferred_element_type=f32) + ba)
        return h + jnp.tanh(jnp.dot(wb, t, preferred_element_type=f32) + bb)

    y = res_block(y, w_hid[0], b_hid[0], w_hid[1], b_hid[1])   # linear2 / linear3
    y = res_block(y, w_hid[2], b_hid[2], w_hid[3], b_hid[3])   # linear4 / linear5

    w_out = w_out_ref[...].astype(f32)
    b_out = b_out_ref[...].astype(f32)
    if output_dim == 1:
        # Degenerate M=1 output "matmul": VPU multiply + XLU sublane reduce.
        out = jnp.sum(w_out * y, axis=0, keepdims=True) + b_out      # (1, tm)
    else:
        out = jax.lax.dot_general(w_out, y, (((0,), (0,)), ((), ())),
                                  preferred_element_type=f32) + jnp.transpose(b_out)
    o_ref[...] = out.astype(o_ref.dtype)


def _pad_batch(n):
    # Large batches pad to 512 (keeps tm 512-aligned for the 2x256 MXU); small
    # batches only pad to 128 so single-TC chips don't compute dead tiles.
    align = 512 if n >= 2048 else 128
    return ((n + align - 1) // align) * align


def _choose_tile(n_pad, cap=16384):
    """Largest tm (pref. multiple of 512, else 256/128) dividing n_pad.

    For large batches the grid is kept >= 4 steps so both v7x TensorCores
    still pipeline their per-step DMAs.  Per-step VMEM is only a few MiB even
    at tm=16384, so the cap is about step-overhead amortization, not VMEM.
    """
    limit = min(cap, n_pad)
    if n_pad >= 4 * 512:
        limit = min(limit, max(512, n_pad // 4))
    for align in (512, 256, 128):
        if n_pad % align:
            continue
        tm = (limit // align) * align
        while tm >= align and n_pad % tm:
            tm -= align
        if tm >= align:
            return tm
    return n_pad


def pack_params(p):
    """One-time repack of PyTorch-layout params into kernel layout.

    Hoisted out of the per-call path so the forward does no per-call
    transposes/stacks of parameters.
    """
    f32 = jnp.float32
    return dict(
        w_in=p["w_in"].T.astype(f32),                                       # (m, input_dim)
        b_in=p["b_in"].T.astype(f32),                                       # (m, 1)
        w_hid=jnp.stack([p["w2"].T, p["w3"].T, p["w4"].T, p["w5"].T]).astype(f32),  # (4, m, m)
        b_hid=jnp.stack([p["b2"].T, p["b3"].T, p["b4"].T, p["b5"].T]).astype(f32),  # (4, m, 1)
        w_out=p["w_out"].astype(f32),                                       # (m, output_dim)
        b_out=p["b_out"].astype(f32),                                       # (1, output_dim)
    )


@jax.jit
def drm_forward(x, packed):
    """x: (N, input_dim) float32; packed: output of pack_params()."""
    N, input_dim = x.shape
    m = packed["w_in"].shape[0]
    output_dim = packed["w_out"].shape[1]

    n_pad = _pad_batch(N)
    tm = _choose_tile(n_pad)
    grid = (n_pad // tm,)

    xT = x.T                                            # (input_dim, N) -> batch on lanes
    if n_pad != N:
        xT = jnp.pad(xT, ((0, 0), (0, n_pad - N)))

    def full_spec(arr):
        nd = arr.ndim
        return pl.BlockSpec(arr.shape, lambda i, _nd=nd: (0,) * _nd)

    in_specs = [pl.BlockSpec((input_dim, tm), lambda i: (0, i))]
    in_specs += [full_spec(packed[k]) for k in ("w_in", "b_in", "w_hid", "b_hid",
                                                "w_out", "b_out")]

    kernel = functools.partial(_drm_kernel, input_dim=input_dim, output_dim=output_dim)

    outT = pl.pallas_call(
        kernel,
        out_shape=jax.ShapeDtypeStruct((output_dim, n_pad), x.dtype),
        grid_spec=pltpu.PrefetchScalarGridSpec(
            num_scalar_prefetch=0,
            grid=grid,
            in_specs=in_specs,
            out_specs=pl.BlockSpec((output_dim, tm), lambda i: (0, i)),
        ),
        compiler_params=pltpu.CompilerParams(
            dimension_semantics=("parallel",),
            vmem_limit_bytes=32 * 1024 * 1024,   # generous; per-step footprint is ~few MiB
        ),
    )(xT, packed["w_in"], packed["b_in"], packed["w_hid"], packed["b_hid"],
      packed["w_out"], packed["b_out"])

    return outT[:, :N].T                                # back to (N, output_dim)


def init_params(key, input_dim=1, output_dim=1, m=16):
    """Deterministic init mimicking PyTorch nn.Linear default U(-1/sqrt(fan_in), +)."""
    def linear_init(k, fan_in, fan_out):
        kw, kb = jax.random.split(k)
        bound = 1.0 / jnp.sqrt(jnp.float32(fan_in))
        w = jax.random.uniform(kw, (fan_in, fan_out), jnp.float32, -bound, bound)
        b = jax.random.uniform(kb, (1, fan_out), jnp.float32, -bound, bound)
        return w, b

    keys = jax.random.split(key, 6)
    w_in, b_in = linear_init(keys[0], input_dim, m)
    w2, b2 = linear_init(keys[1], m, m)
    w3, b3 = linear_init(keys[2], m, m)
    w4, b4 = linear_init(keys[3], m, m)
    w5, b5 = linear_init(keys[4], m, m)
    w_out, b_out = linear_init(keys[5], m, output_dim)
    return dict(w_in=w_in, b_in=b_in, w2=w2, b2=b2, w3=w3, b3=b3,
                w4=w4, b4=b4, w5=w5, b5=b5, w_out=w_out, b_out=b_out)


def drm_reference(x, p):
    def lin(h, w, b):
        return h @ w + b
    y = jnp.tanh(lin(x, p["w_in"], p["b_in"]))
    y = y + jnp.tanh(lin(jnp.tanh(lin(y, p["w2"], p["b2"])), p["w3"], p["b3"]))
    y = y + jnp.tanh(lin(jnp.tanh(lin(y, p["w4"], p["b4"])), p["w5"], p["b5"]))
    return lin(y, p["w_out"], p["b_out"])


if __name__ == "__main__":
    key = jax.random.PRNGKey(0)
    k_param, k_x = jax.random.split(key)

    input_dim, output_dim, m = 1, 1, 16
    N = 256  # batch of 1-D sample points

    params = init_params(k_param, input_dim, output_dim, m)
    packed = pack_params(params)          # one-time parameter repack (hoisted out of forward)
    x = jax.random.uniform(k_x, (N, input_dim), jnp.float32, 0.0, 1.0)

    out = jax.block_until_ready(drm_forward(x, packed))

    ref = drm_reference(x, params)
    assert out.shape == (N, output_dim)
    assert jnp.allclose(out, ref, atol=1e-5, rtol=1e-5), float(jnp.max(jnp.abs(out - ref)))

    print("KERNEL_OK")
</pallas_src>

<mosaic_0001>
module attributes {stable_mosaic.version = 11 : i64} {
  func.func @_drm_kernel(%arg0: i32, %arg1: memref<1x256xf32, #tpu.memory_space<vmem>>, %arg2: memref<16x1xf32, #tpu.memory_space<vmem>>, %arg3: memref<16x1xf32, #tpu.memory_space<vmem>>, %arg4: memref<4x16x16xf32, #tpu.memory_space<vmem>>, %arg5: memref<4x16x1xf32, #tpu.memory_space<vmem>>, %arg6: memref<16x1xf32, #tpu.memory_space<vmem>>, %arg7: memref<1x1xf32, #tpu.memory_space<vmem>>, %arg8: memref<1x256xf32, #tpu.memory_space<vmem>>) attributes {dimension_semantics = [#tpu.dimension_semantics<parallel>], iteration_bounds = array<i64: 1>, scalar_prefetch = 0 : i64, scratch_operands = 0 : i64, tpu.core_type = #tpu.core_type<tc>, window_params = [{transform_indices = @transform_0, window_bounds = array<i64: 1, 256>}, {pipeline_mode = #tpu.pipeline_mode<synchronous>, transform_indices = @transform_1, window_bounds = array<i64: 16, 1>}, {pipeline_mode = #tpu.pipeline_mode<synchronous>, transform_indices = @transform_2, window_bounds = array<i64: 16, 1>}, {pipeline_mode = #tpu.pipeline_mode<synchronous>, transform_indices = @transform_3, window_bounds = array<i64: 4, 16, 16>}, {pipeline_mode = #tpu.pipeline_mode<synchronous>, transform_indices = @transform_4, window_bounds = array<i64: 4, 16, 1>}, {pipeline_mode = #tpu.pipeline_mode<synchronous>, transform_indices = @transform_5, window_bounds = array<i64: 16, 1>}, {pipeline_mode = #tpu.pipeline_mode<synchronous>, transform_indices = @transform_6, window_bounds = array<i64: 1, 1>}, {transform_indices = @transform_7, window_bounds = array<i64: 1, 256>}]} {
    %c0 = arith.constant 0 : index
    %c0_0 = arith.constant 0 : index
    %0 = vector.load %arg1[%c0, %c0_0] : memref<1x256xf32, #tpu.memory_space<vmem>>, vector<1x256xf32>
    %c0_1 = arith.constant 0 : index
    %c0_2 = arith.constant 0 : index
    %1 = vector.load %arg2[%c0_1, %c0_2] : memref<16x1xf32, #tpu.memory_space<vmem>>, vector<16x1xf32>
    %c0_3 = arith.constant 0 : index
    %c0_4 = arith.constant 0 : index
    %2 = vector.load %arg3[%c0_3, %c0_4] : memref<16x1xf32, #tpu.memory_space<vmem>>, vector<16x1xf32>
    %3 = vector.broadcast %1 : vector<16x1xf32> to vector<16x256xf32>
    %4 = vector.broadcast %0 : vector<1x256xf32> to vector<16x256xf32>
    %5 = arith.mulf %3, %4 : vector<16x256xf32>
    %6 = vector.broadcast %2 : vector<16x1xf32> to vector<16x256xf32>
    %7 = arith.addf %5, %6 : vector<16x256xf32>
    %8 = math.tanh %7 : vector<16x256xf32>
    %c0_5 = arith.constant 0 : index
    %c0_6 = arith.constant 0 : index
    %c0_7 = arith.constant 0 : index
    %9 = vector.load %arg4[%c0_5, %c0_6, %c0_7] : memref<4x16x16xf32, #tpu.memory_space<vmem>>, vector<4x16x16xf32>
    %c0_8 = arith.constant 0 : index
    %c0_9 = arith.constant 0 : index
    %c0_10 = arith.constant 0 : index
    %10 = vector.load %arg5[%c0_8, %c0_9, %c0_10] : memref<4x16x1xf32, #tpu.memory_space<vmem>>, vector<4x16x1xf32>
    %11 = vector.extract_strided_slice %9 {offsets = [0, 0, 0], sizes = [1, 16, 16], strides = [1, 1, 1]} : vector<4x16x16xf32> to vector<1x16x16xf32>
    %12 = vector.shape_cast %11 : vector<1x16x16xf32> to vector<16x16xf32>
    %13 = vector.extract_strided_slice %10 {offsets = [0, 0, 0], sizes = [1, 16, 1], strides = [1, 1, 1]} : vector<4x16x1xf32> to vector<1x16x1xf32>
    %14 = vector.shape_cast %13 : vector<1x16x1xf32> to vector<16x1xf32>
    %15 = vector.extract_strided_slice %9 {offsets = [1, 0, 0], sizes = [1, 16, 16], strides = [1, 1, 1]} : vector<4x16x16xf32> to vector<1x16x16xf32>
    %16 = vector.shape_cast %15 : vector<1x16x16xf32> to vector<16x16xf32>
    %17 = vector.extract_strided_slice %10 {offsets = [1, 0, 0], sizes = [1, 16, 1], strides = [1, 1, 1]} : vector<4x16x1xf32> to vector<1x16x1xf32>
    %18 = vector.shape_cast %17 : vector<1x16x1xf32> to vector<16x1xf32>
    %cst = arith.constant dense<0.000000e+00> : vector<16x256xf32>
    %19 = tpu.matmul %12, %8, %cst {dimension_numbers = #tpu.dot_dimension_numbers<[1], [0], [0], [1], [0, 0, 1, 1], [], []>} : vector<16x16xf32>, vector<16x256xf32>, vector<16x256xf32> -> vector<16x256xf32>
    %20 = vector.broadcast %14 : vector<16x1xf32> to vector<16x256xf32>
    %21 = arith.addf %19, %20 : vector<16x256xf32>
    %22 = math.tanh %21 : vector<16x256xf32>
    %cst_11 = arith.constant dense<0.000000e+00> : vector<16x256xf32>
    %23 = tpu.matmul %16, %22, %cst_11 {dimension_numbers = #tpu.dot_dimension_numbers<[1], [0], [0], [1], [0, 0, 1, 1], [], []>} : vector<16x16xf32>, vector<16x256xf32>, vector<16x256xf32> -> vector<16x256xf32>
    %24 = vector.broadcast %18 : vector<16x1xf32> to vector<16x256xf32>
    %25 = arith.addf %23, %24 : vector<16x256xf32>
    %26 = math.tanh %25 : vector<16x256xf32>
    %27 = arith.addf %8, %26 : vector<16x256xf32>
    %28 = vector.extract_strided_slice %9 {offsets = [2, 0, 0], sizes = [1, 16, 16], strides = [1, 1, 1]} : vector<4x16x16xf32> to vector<1x16x16xf32>
    %29 = vector.shape_cast %28 : vector<1x16x16xf32> to vector<16x16xf32>
    %30 = vector.extract_strided_slice %10 {offsets = [2, 0, 0], sizes = [1, 16, 1], strides = [1, 1, 1]} : vector<4x16x1xf32> to vector<1x16x1xf32>
    %31 = vector.shape_cast %30 : vector<1x16x1xf32> to vector<16x1xf32>
    %32 = vector.extract_strided_slice %9 {offsets = [3, 0, 0], sizes = [1, 16, 16], strides = [1, 1, 1]} : vector<4x16x16xf32> to vector<1x16x16xf32>
    %33 = vector.shape_cast %32 : vector<1x16x16xf32> to vector<16x16xf32>
    %34 = vector.extract_strided_slice %10 {offsets = [3, 0, 0], sizes = [1, 16, 1], strides = [1, 1, 1]} : vector<4x16x1xf32> to vector<1x16x1xf32>
    %35 = vector.shape_cast %34 : vector<1x16x1xf32> to vector<16x1xf32>
    %cst_12 = arith.constant dense<0.000000e+00> : vector<16x256xf32>
    %36 = tpu.matmul %29, %27, %cst_12 {dimension_numbers = #tpu.dot_dimension_numbers<[1], [0], [0], [1], [0, 0, 1, 1], [], []>} : vector<16x16xf32>, vector<16x256xf32>, vector<16x256xf32> -> vector<16x256xf32>
    %37 = vector.broadcast %31 : vector<16x1xf32> to vector<16x256xf32>
    %38 = arith.addf %36, %37 : vector<16x256xf32>
    %39 = math.tanh %38 : vector<16x256xf32>
    %cst_13 = arith.constant dense<0.000000e+00> : vector<16x256xf32>
    %40 = tpu.matmul %33, %39, %cst_13 {dimension_numbers = #tpu.dot_dimension_numbers<[1], [0], [0], [1], [0, 0, 1, 1], [], []>} : vector<16x16xf32>, vector<16x256xf32>, vector<16x256xf32> -> vector<16x256xf32>
    %41 = vector.broadcast %35 : vector<16x1xf32> to vector<16x256xf32>
    %42 = arith.addf %40, %41 : vector<16x256xf32>
    %43 = math.tanh %42 : vector<16x256xf32>
    %44 = arith.addf %27, %43 : vector<16x256xf32>
    %c0_14 = arith.constant 0 : index
    %c0_15 = arith.constant 0 : index
    %45 = vector.load %arg6[%c0_14, %c0_15] : memref<16x1xf32, #tpu.memory_space<vmem>>, vector<16x1xf32>
    %c0_16 = arith.constant 0 : index
    %c0_17 = arith.constant 0 : index
    %46 = vector.load %arg7[%c0_16, %c0_17] : memref<1x1xf32, #tpu.memory_space<vmem>>, vector<1x1xf32>
    %47 = vector.broadcast %45 : vector<16x1xf32> to vector<16x256xf32>
    %48 = arith.mulf %47, %44 : vector<16x256xf32>
    %cst_18 = arith.constant dense<0.000000e+00> : vector<256xf32>
    %49 = vector.multi_reduction <add>, %48, %cst_18 [0] : vector<16x256xf32> to vector<256xf32>
    %50 = vector.shape_cast %49 : vector<256xf32> to vector<1x256xf32>
    %51 = vector.broadcast %46 : vector<1x1xf32> to vector<1x256xf32>
    %52 = arith.addf %50, %51 : vector<1x256xf32>
    %c0_19 = arith.constant 0 : index
    %c0_20 = arith.constant 0 : index
    %53 = vector.load %arg8[%c0_19, %c0_20] : memref<1x256xf32, #tpu.memory_space<vmem>>, vector<1x256xf32>
    tpu.vector_store %arg8[%c0_19, %c0_20], %52 {strides = array<i32>} : memref<1x256xf32, #tpu.memory_space<vmem>>, vector<1x256xf32>,
    return
  }
  func.func @transform_0(%arg0: i32) -> (i32, i32) {
    %c0_i32 = arith.constant 0 : i32
    %c0_i32_0 = arith.constant 0 : i32
    return %c0_i32, %arg0 : i32, i32
  }
  func.func @transform_1(%arg0: i32) -> (i32, i32) {
    %c0_i32 = arith.constant 0 : i32
    %c0_i32_0 = arith.constant 0 : i32
    %c0_i32_1 = arith.constant 0 : i32
    return %c0_i32, %c0_i32_0 : i32, i32
  }
  func.func @transform_2(%arg0: i32) -> (i32, i32) {
    %c0_i32 = arith.constant 0 : i32
    %c0_i32_0 = arith.constant 0 : i32
    %c0_i32_1 = arith.constant 0 : i32
    return %c0_i32, %c0_i32_0 : i32, i32
  }
  func.func @transform_3(%arg0: i32) -> (i32, i32, i32) {
    %c0_i32 = arith.constant 0 : i32
    %c0_i32_0 = arith.constant 0 : i32
    %c0_i32_1 = arith.constant 0 : i32
    %c0_i32_2 = arith.constant 0 : i32
    return %c0_i32, %c0_i32_0, %c0_i32_1 : i32, i32, i32
  }
  func.func @transform_4(%arg0: i32) -> (i32, i32, i32) {
    %c0_i32 = arith.constant 0 : i32
    %c0_i32_0 = arith.constant 0 : i32
    %c0_i32_1 = arith.constant 0 : i32
    %c0_i32_2 = arith.constant 0 : i32
    return %c0_i32, %c0_i32_0, %c0_i32_1 : i32, i32, i32
  }
  func.func @transform_5(%arg0: i32) -> (i32, i32) {
    %c0_i32 = arith.constant 0 : i32
    %c0_i32_0 = arith.constant 0 : i32
    %c0_i32_1 = arith.constant 0 : i32
    return %c0_i32, %c0_i32_0 : i32, i32
  }
  func.func @transform_6(%arg0: i32) -> (i32, i32) {
    %c0_i32 = arith.constant 0 : i32
    %c0_i32_0 = arith.constant 0 : i32
    %c0_i32_1 = arith.constant 0 : i32
    return %c0_i32, %c0_i32_0 : i32, i32
  }
  func.func @transform_7(%arg0: i32) -> (i32, i32) {
    %c0_i32 = arith.constant 0 : i32
    %c0_i32_0 = arith.constant 0 : i32
    return %c0_i32, %arg0 : i32, i32
  }
}

</mosaic_0001>

<bundles_post_ra>
// kernel: drm_forward.1
= control target key start
LH: loop header
LB: loop body
LE: loop exit
PB: predicated region body
PF: predicated region fallthrough
CT: control target
= control target key end

     0   :  { %s795_s0 = inlined_call_operand.vmem [shape: f32[1,256], index: 0, kind: input, shape index: {}]   ;;  %s796_s1 = inlined_call_operand.vmem [shape: f32[16,1], index: 1, kind: input, shape index: {}]   ;;  %s797_s2 = inlined_call_operand.vmem [shape: f32[16,1], index: 2, kind: input, shape index: {}]   ;;  %s798_s3 = inlined_call_operand.vmem [shape: f32[4,16,16], index: 3, kind: input, shape index: {}]   ;;  %s799_s4 = inlined_call_operand.vmem [shape: f32[4,16,1], index: 4, kind: input, shape index: {}]   ;;  %s800_s5 = inlined_call_operand.vmem [shape: f32[16,1], index: 5, kind: input, shape index: {}]   ;;  %s801_s6 = inlined_call_operand.<no memory space> [shape: f32[1,1], index: 6, kind: input, shape index: {}]   ;;  %s802_s7 = inlined_call_operand.hbm [shape: f32[1,256], index: 7, kind: output, shape index: {}]  }
   0x1   :  { %v12_v0 = vstv %s801_s6 }
   0x2   :  { %13 = vst [vmem:[#allocation2] sm:$0x1] %v12_v0 }
   0x3   :  { %v33_v1 = vld [vmem:[%s797_s2 + $0x8] sm:$0xff]  ;;  %v645_v3 = vmov 0   ;;  %v32_v4 = vld [vmem:[%s797_s2] sm:$0xff] }
   0x4   :  { %v31_v2 = vld [vmem:[%s796_s1 + $0x8] sm:$0xff]  ;;  %582 = vset.pattern.permute.xlu1 %v645_v3  ;;  %581 = vset.pattern.permute.xlu0 %v645_v3  ;;  %v30_v5 = vld [vmem:[%s796_s1] sm:$0xff] }
   0x5   :  { %66 = vperm.xlu1 %582, %v33_v1   ;;  %41 = vperm.xlu0 %581, %v31_v2  }
   0x6   :  { %14 = vsyncpa [#allocation4], 0  ;;  %v85_v6 = vld [vmem:[%s799_s4] sm:$0xff]  ;;  %v86_v7 = vld [vmem:[%s799_s4 + $0x8] sm:$0xff]  ;;  %v646_v16 = vmov 0.0   ;;  %v45_v18 = vlaneseq  ;;  %vm103_vm0 = vcmask 130048  }
   0x7   :  { %v87_v8 = vld [vmem:[%s799_s4 + $0x10] sm:$0xff]  ;;  %v88_v9 = vld [vmem:[%s799_s4 + $0x18] sm:$0xff]  ;;  %v89_v10 = vld [vmem:[%s799_s4 + $0x20] sm:$0xff]  ;;  %174 = vmatprep.mubr.f32.mxu0 %v646_v16  ;;  %271 = vmatprep.mubr.f32.mxu1 %v646_v16 }
   0x8   :  { %v90_v11 = vld [vmem:[%s799_s4 + $0x28] sm:$0xff]  ;;  %v92_v12 = vld [vmem:[%s799_s4 + $0x38] sm:$0xff]  ;;  %v91_v13 = vld [vmem:[%s799_s4 + $0x30] sm:$0xff]  ;;  %v737_v19 = vshrl.u32 %v45_v18, 7  ;;  %vm552_vm1 = vcmp.lt.s32.totalorder %v45_v18, 256 }
   0x9   :  { %61 = vperm.xlu1 %582, %v32_v4   ;;  %36 = vperm.xlu0 %581, %v30_v5   ;;  %v491_v14 = vld [vmem:[%s800_s5 + $0x8] sm:$0xff]  ;;  %v490_v15 = vld [vmem:[%s800_s5] sm:$0xff]  ;;  %v79_v56 = vld [vmem:[%s798_s3 + $0x10] sm:$0xff] }
   0xa   :  { %v492_v17 = vld [vmem:[#allocation2] sm:$0x1]  ;;  %v47_v20 = vsub.s32 0, %v737_v19  ;;  %v51_v21 = vsub.s32 1, %v737_v19  ;;  %v78_v42 = vld [vmem:[%s798_s3 + $0x8] sm:$0xff]  ;;  %v80_v58 = vld [vmem:[%s798_s3 + $0x18] sm:$0xff] }
   0xb   :  { %v29_v22 = vld [vmem:[%s795_s0] sm:$0x3] }
   0xc   :  { %v48_v23 = vrot.slane %v29_v22, %v47_v20  ;;  %v52_v24 = vrot.slane %v29_v22, %v51_v21  ;;  %v77_v41 = vld [vmem:[%s798_s3] sm:$0xff] }
   0xd   :  { %95 = vperm.xlu1 %582, %v85_v6   ;;  %100 = vperm.xlu0 %581, %v86_v7  }
  0x11   :  { %193 = vperm.xlu1 %582, %v87_v8   ;;  %198 = vperm.xlu0 %581, %v88_v9  }
  0x15   :  { %294 = vperm.xlu1 %582, %v89_v10   ;;  %299 = vperm.xlu0 %581, %v90_v11  }
  0x19   :  { %396 = vperm.xlu1 %582, %v92_v12   ;;  %391 = vperm.xlu0 %581, %v91_v13   ;;  %v81_v13 = vld [vmem:[%s798_s3 + $0x20] sm:$0xff] }
  0x1d   :  { %500 = vperm.xlu1 %582, %v491_v14   ;;  %495 = vperm.xlu0 %581, %v490_v15   ;;  %v82_v14 = vld [vmem:[%s798_s3 + $0x28] sm:$0xff] }
  0x21   :  { %523 = vperm.xlu0 %581, %v492_v17  }
  0x80   :  { %v67_v25 = vpop.permute.xlu1 %66  ;;  %v42_v26 = vpop.permute.xlu0 %41 }
  0x81   :  { %v57_v27 = vmul.f32 %v48_v23, %v42_v26  ;;  %v58_v28 = vmul.f32 %v52_v24, %v42_v26 }
  0x83   :  { %v71_v29 = vadd.f32 %v67_v25, %v57_v27  ;;  %v72_v30 = vadd.f32 %v67_v25, %v58_v28 }
  0x84   :  { %v37_v31 = vpop.permute.xlu0 %36  ;;  %v62_v34 = vpop.permute.xlu1 %61 }
  0x85   :  { %583 = vtanh.f32 %v71_v29  ;;  %v55_v32 = vmul.f32 %v48_v23, %v37_v31  ;;  %v56_v33 = vmul.f32 %v52_v24, %v37_v31 }
  0x86   :  { %585 = vtanh.f32 %v72_v30 }
  0x87   :  { %v69_v35 = vadd.f32 %v62_v34, %v55_v32  ;;  %v70_v36 = vadd.f32 %v62_v34, %v56_v33  ;;  %v83_v32 = vld [vmem:[%s798_s3 + $0x30] sm:$0xff]  ;;  %v84_v34 = vld [vmem:[%s798_s3 + $0x38] sm:$0xff]  ;;  %s648_s3 = smov [#allocation3]  }
  0x88   :  { %v101_v46 = vpop.permute.xlu0 %100  ;;  %v96_v47 = vpop.permute.xlu1 %95  ;;  %s561_s17 = sshll.u32 %s648_s3, 4  ;;  %s562_s17 = int_to_ptr.vmem [resolvable:$true] %s561_s17 }
  0x89   :  { %587 = vtanh.f32 %v69_v35  ;;  %s623_s18 = scalar_lea.vmem %s562_s17, 32  ;;  %p628_p1 = scmp.lt.s32.totalorder %s562_s17, %s562_s17 }
  0x8a   :  { %589 = vtanh.f32 %v70_v36  ;;  %p624_p0 = scmp.ne.s32.totalorder %s562_s17, %s623_s18  ;;  %p629_p2 = scmp.lt.s32.totalorder %s623_s18, %s623_s18 }
  0x8c   :  { %v194_v60 = vpop.permute.xlu1 %193  ;;  %v199_v63 = vpop.permute.xlu0 %198  ;;  %p630_p3 = por %p629_p2, %p628_p1 }
  0x8e   :  { %p631_p4 = pnand %p630_p3, %p624_p0 }
  0x90   :  { %v300_v22 = vpop.permute.xlu0 %299  ;;  %v295_v23 = vpop.permute.xlu1 %294 }
  0x92   :  { %v584_v37 = vpop.eup %583 }
  0x93   :  { %v586_v38 = vpop.eup %585 }
  0x94   :  { %138 = vmatprep.subr.mxu0 %v586_v38  ;;  %v392_v35 = vpop.permute.xlu0 %391 }
  0x95   :  { %139 = vmatpush1.msra.mxu0 %v584_v37 }
  0x96   :  { %v588_v39 = vpop.eup %587 }
  0x97   :  { %v590_v40 = vpop.eup %589 }
  0x98   :  { %140 = vmatprep.subr.mxu0 %v590_v40 }
  0x99   :  { %141 = vmatpush1.msra.mxu0 %v588_v39 }
  0x9a   :  { %569 = vmatmul.mubr.msk.f32.vlgmr.msra.gmra.mxu0 %vm103_vm0, %v77_v41 }
  0x9b   :  { %180 = vmatprep.mubr.f32.mxu0 %v646_v16 }
  0x9e   :  { %570 = vmatmul.mubr.msk.f32.gmra.mxu0 %vm103_vm0, %v78_v42 }
  0x9f   :  { %372 = vmatprep.mubr.f32.mxu0 %v646_v16 }
 0x15a   :  { %v176_v43 = vpop.f32.mrf.mxu0 }
 0x15b   :  { %v177_v52 = vadd.f32 %v176_v43, %v96_v47 }
 0x15c   :  { %v178_v44 = vpop.f32.mrf.mxu0 }
 0x15d   :  { %v179_v50 = vadd.f32 %v178_v44, %v96_v47 }
 0x15e   :  { %v182_v45 = vpop.f32.mrf.mxu0 }
 0x15f   :  { %v183_v48 = vadd.f32 %v182_v45, %v101_v46 }
 0x160   :  { %v184_v49 = vpop.f32.mrf.mxu0 }
 0x161   :  { %v185_v51 = vadd.f32 %v184_v49, %v101_v46 }
 0x163   :  { %591 = vtanh.f32 %v185_v51 }
 0x164   :  { %593 = vtanh.f32 %v183_v48 }
 0x165   :  { %595 = vtanh.f32 %v179_v50 }
 0x166   :  { %597 = vtanh.f32 %v177_v52  ;;  %v496_v52 = vpop.permute.xlu0 %495 }
 0x170   :  { %v592_v53 = vpop.eup %591 }
 0x171   :  { %v594_v54 = vpop.eup %593  ;;  %235 = vmatprep.subr.mxu1 %v592_v53 }
 0x172   :  { %v596_v55 = vpop.eup %595  ;;  %236 = vmatpush1.msra.mxu1 %v594_v54 }
 0x173   :  { %v598_v57 = vpop.eup %597  ;;  %237 = vmatprep.subr.mxu1 %v596_v55 }
 0x174   :  { %238 = vmatpush1.msra.mxu1 %v598_v57 }
 0x175   :  { %571 = vmatmul.mubr.msk.f32.vlgmr.msra.gmra.mxu1 %vm103_vm0, %v79_v56 }
 0x176   :  { %277 = vmatprep.mubr.f32.mxu1 %v646_v16 }
 0x179   :  { %572 = vmatmul.mubr.msk.f32.gmra.mxu1 %vm103_vm0, %v80_v58 }
 0x17a   :  { %469 = vmatprep.mubr.f32.mxu1 %v646_v16 }
 0x235   :  { %v273_v59 = vpop.f32.mrf.mxu1 }
 0x236   :  { %v274_v2 = vadd.f32 %v273_v59, %v194_v60 }
 0x237   :  { %v275_v61 = vpop.f32.mrf.mxu1 }
 0x238   :  { %v276_v62 = vadd.f32 %v275_v61, %v194_v60 }
 0x239   :  { %v279_v0 = vpop.f32.mrf.mxu1 }
 0x23a   :  { %v280_v1 = vadd.f32 %v279_v0, %v199_v63  ;;  %599 = vtanh.f32 %v276_v62 }
 0x23b   :  { %v281_v3 = vpop.f32.mrf.mxu1 }
 0x23c   :  { %v282_v4 = vadd.f32 %v281_v3, %v199_v63  ;;  %601 = vtanh.f32 %v280_v1  ;;  %v647_v3 = vmov 1966171168  }
 0x23e   :  { %603 = vtanh.f32 %v282_v4  ;;  %v536_v4 = vunpack.c.l.s4 %v647_v3 }
 0x23f   :  { %605 = vtanh.f32 %v274_v2 }
 0x247   :  { %v600_v5 = vpop.eup %599 }
 0x248   :  { %v289_v11 = vadd.f32 %v600_v5, %v590_v40  ;;  %v397_v40 = vpop.permute.xlu1 %396 }
 0x249   :  { %v602_v6 = vpop.eup %601 }
 0x24a   :  { %v290_v10 = vadd.f32 %v602_v6, %v584_v37 }
 0x24b   :  { %v604_v7 = vpop.eup %603 }
 0x24c   :  { %v606_v8 = vpop.eup %605  ;;  %v766_v9 = vadd.f32 %v604_v7, %v586_v38  ;;  %v501_v51 = vpop.permute.xlu1 %500 }
 0x24d   :  { %v288_v12 = vadd.f32 %v606_v8, %v588_v39  ;;  %v524_v7 = vpop.permute.xlu0 %523 }
 0x24e   :  { %336 = vmatprep.subr.mxu0 %v766_v9 }
 0x24f   :  { %337 = vmatpush1.msra.mxu0 %v290_v10 }
 0x250   :  { %338 = vmatprep.subr.mxu0 %v289_v11 }
 0x251   :  { %339 = vmatpush1.msra.mxu0 %v288_v12 }
 0x252   :  { %573 = vmatmul.mubr.msk.f32.vlgmr.msra.gmra.mxu0 %vm103_vm0, %v81_v13 }
 0x253   :  { %378 = vmatprep.mubr.f32.mxu0 %v646_v16 }
 0x256   :  { %574 = vmatmul.mubr.msk.f32.gmra.mxu0 %vm103_vm0, %v82_v14 }
 0x312   :  { %v374_v15 = vpop.f32.mrf.mxu0 }
 0x313   :  { %v375_v28 = vadd.f32 %v374_v15, %v295_v23 }
 0x314   :  { %v376_v17 = vpop.f32.mrf.mxu0 }
 0x315   :  { %v377_v26 = vadd.f32 %v376_v17, %v295_v23 }
 0x316   :  { %v380_v21 = vpop.f32.mrf.mxu0 }
 0x317   :  { %v381_v24 = vadd.f32 %v380_v21, %v300_v22 }
 0x318   :  { %v382_v25 = vpop.f32.mrf.mxu0 }
 0x319   :  { %v383_v27 = vadd.f32 %v382_v25, %v300_v22 }
 0x31b   :  { %607 = vtanh.f32 %v383_v27 }
 0x31c   :  { %609 = vtanh.f32 %v381_v24 }
 0x31d   :  { %611 = vtanh.f32 %v377_v26 }
 0x31e   :  { %613 = vtanh.f32 %v375_v28 }
 0x328   :  { %v608_v29 = vpop.eup %607 }
 0x329   :  { %v610_v30 = vpop.eup %609  ;;  %433 = vmatprep.subr.mxu1 %v608_v29 }
 0x32a   :  { %v612_v31 = vpop.eup %611  ;;  %434 = vmatpush1.msra.mxu1 %v610_v30 }
 0x32b   :  { %v614_v33 = vpop.eup %613  ;;  %435 = vmatprep.subr.mxu1 %v612_v31 }
 0x32c   :  { %436 = vmatpush1.msra.mxu1 %v614_v33 }
 0x32d   :  { %575 = vmatmul.mubr.msk.f32.vlgmr.msra.gmra.mxu1 %vm103_vm0, %v83_v32 }
 0x32e   :  { %475 = vmatprep.mubr.f32.mxu1 %v646_v16 }
 0x331   :  { %576 = vmatmul.mubr.msk.f32.gmra.mxu1 %vm103_vm0, %v84_v34 }
 0x3ed   :  { %v471_v36 = vpop.f32.mrf.mxu1 }
 0x3ee   :  { %v472_v37 = vadd.f32 %v471_v36, %v392_v35 }
 0x3ef   :  { %v473_v38 = vpop.f32.mrf.mxu1 }
 0x3f0   :  { %615 = vtanh.f32 %v472_v37  ;;  %v474_v39 = vadd.f32 %v473_v38, %v392_v35 }
 0x3f1   :  { %v477_v41 = vpop.f32.mrf.mxu1 }
 0x3f2   :  { %617 = vtanh.f32 %v474_v39  ;;  %v478_v42 = vadd.f32 %v477_v41, %v397_v40 }
 0x3f3   :  { %v479_v43 = vpop.f32.mrf.mxu1 }
 0x3f4   :  { %619 = vtanh.f32 %v478_v42  ;;  %v480_v44 = vadd.f32 %v479_v43, %v397_v40 }
 0x3f6   :  { %621 = vtanh.f32 %v480_v44 }
 0x3fd   :  { %v616_v16 = vpop.eup %615 }
 0x3fe   :  { %v486_v46 = vadd.f32 %v616_v16, %v288_v12 }
 0x3ff   :  { %v618_v45 = vpop.eup %617 }
 0x400   :  { %v487_v48 = vadd.f32 %v618_v45, %v289_v11  ;;  %v503_v53 = vmul.f32 %v496_v52, %v486_v46  ;;  %v537_v11 = vunpack.c.0.s8 %v536_v4 }
 0x401   :  { %v620_v47 = vpop.eup %619 }
 0x402   :  { %v488_v49 = vadd.f32 %v620_v47, %v290_v10  ;;  %v504_v56 = vmul.f32 %v496_v52, %v487_v48  ;;  %v540_v15 = vsub.s32 %v537_v11, %v737_v19 }
 0x403   :  { %v622_v50 = vpop.eup %621 }
 0x404   :  { %v505_v54 = vmul.f32 %v501_v51, %v488_v49  ;;  %v489_v55 = vadd.f32 %v622_v50, %v766_v9  ;;  %v529_v9 = vrot.slane %v524_v7, %v47_v20 }
 0x406   :  { %v506_v57 = vmul.f32 %v501_v51, %v489_v55  ;;  %v507_v58 = vadd.f32 %v505_v54, %v503_v53 }
 0x408   :  { %v508_v59 = vrot.slane %v507_v58, 4  ;;  %v514_v60 = vadd.f32 %v506_v57, %v504_v56 }
 0x40a   :  { %v509_v61 = vadd.f32 %v508_v59, %v507_v58  ;;  %v515_v62 = vrot.slane %v514_v60, 4 }
 0x40c   :  { %v510_v63 = vrot.slane %v509_v61, 2  ;;  %v516_v0 = vadd.f32 %v515_v62, %v514_v60 }
 0x40e   :  { %v511_v1 = vadd.f32 %v510_v63, %v509_v61  ;;  %v517_v2 = vrot.slane %v516_v0, 2 }
 0x410   :  { %v512_v5 = vrot.slane %v511_v1, 1  ;;  %v518_v6 = vadd.f32 %v517_v2, %v516_v0 }
 0x412   :  { %v513_v8 = vadd.f32 %v512_v5, %v511_v1  ;;  %v519_v10 = vrot.slane %v518_v6, 1 }
 0x414   :  { %v520_v12 = vadd.f32 %v519_v10, %v518_v6  ;;  %v530_v13 = vadd.f32 %v529_v9, %v513_v8 }
 0x416   :  { %v531_v14 = vadd.f32 %v529_v9, %v520_v12 }
 0x418   :  { %v534_v17 = vcombine.low %v530_v13, %v531_v14 }
 0x41a   :  { %v541_v21 = vrot.slane %v534_v17, %v540_v15 }
 0x41c   :  { %v548_v22 = vrot.slane %v541_v21, %v540_v15 }
 0x41e   :  { %554 = vst.msk [vmem:[#allocation3] sm:$0x3] %vm552_vm1, %v548_v22 }
 0x41f   :  { %634 = shalt.err (!%p631_p4)
}
 0x420   :  { %564 = dma.vmem_to_hbm [thread:$0]  %s562_s17, 32, %s802_s7, [#allocation4]  }
 0x421   :  { %643 = dma.done.wait [#allocation4], 32  }
 0x422   :  { %644 = vsyncadd [#allocation4], 4294967264 }
 0x423   :  { %568 = vsyncpa [#allocation4], 1 }

</bundles_post_ra>
